<compile_context>
chip_gen: v7x
topology: tpu7x:2x2x1
jax: 0.10.0
libtpu: 0.0.40
codegen_flags: <defaults>
</compile_context>

<pallas_src>
import functools

import jax
import jax.numpy as jnp
from jax.experimental import pallas as pl
from jax.experimental.pallas import tpu as pltpu

LOG_STD_MIN = -20.0
LOG_STD_MAX = 2.0
LN_EPS = 1e-5  # nn.LayerNorm default


def _round_up(x, m):
    return (x + m - 1) // m * m


def _layernorm(x, gamma, beta):
    # PyTorch LayerNorm: biased variance over the last dim, eps inside rsqrt.
    # Single-pass stats: one sum + one sum-of-squares (halves XLU reductions).
    inv_n = 1.0 / x.shape[-1]
    s1 = jnp.sum(x, axis=-1, keepdims=True)
    s2 = jnp.sum(x * x, axis=-1, keepdims=True)
    mean = s1 * inv_n
    var = jnp.maximum(s2 * inv_n - mean * mean, 0.0)
    return (x - mean) * jax.lax.rsqrt(var + LN_EPS) * gamma + beta


def _silu(x):
    # sigmoid routes exp/recip to the EUP slot; avoids inf*0 for very negative x.
    return x * jax.nn.sigmoid(x)


def _policy_kernel(
    a_dim,
    s_ref,
    w1_ref, b1_ref, g1_ref, be1_ref,
    w2_ref, b2_ref, g2_ref, be2_ref,
    wh_ref, bh_ref,
    out_ref,
):
    cd = w1_ref.dtype  # MXU operand dtype (f32 or bf16); accumulation stays f32.

    # Block 1: Linear -> LayerNorm -> SiLU (elementwise path in f32).
    h = jnp.dot(s_ref[...].astype(cd), w1_ref[...],
                preferred_element_type=jnp.float32) + b1_ref[...]
    h = _silu(_layernorm(h, g1_ref[...], be1_ref[...]))

    # Block 2: Linear -> LayerNorm -> SiLU.
    h = jnp.dot(h.astype(cd), w2_ref[...],
                preferred_element_type=jnp.float32) + b2_ref[...]
    h = _silu(_layernorm(h, g2_ref[...], be2_ref[...]))

    # Fused heads: one MXU push producing [mu | log_std | zero-pad] (lane-dense).
    out = jnp.dot(h.astype(cd), wh_ref[...],
                  preferred_element_type=jnp.float32) + bh_ref[...]

    # Clamp only the log_std lanes (>= a_dim); padded lanes are zeros -> no-op.
    lane = jax.lax.broadcasted_iota(jnp.int32, out.shape, 1)
    out_ref[...] = jnp.where(lane >= a_dim,
                             jnp.clip(out, LOG_STD_MIN, LOG_STD_MAX),
                             out)


def gaussian_policy_forward(s, params, *, tile_b=512, matmul_dtype=jnp.float32):
    """s: (B, s_dim) float32; params: dict of weights. Returns (mu, log_std)."""
    B, s_dim = s.shape
    hidden = params["w1"].shape[1]
    a_dim = params["wmu"].shape[1]
    head_pad = _round_up(2 * a_dim, 128)  # lane-dense fused head width

    # Fuse + zero-pad the two head projections into one (hidden, 128k) matmul.
    # (In a real policy these fused arrays would be built once at init time.)
    wh = jnp.zeros((hidden, head_pad), jnp.float32)
    wh = wh.at[:, :a_dim].set(params["wmu"]).at[:, a_dim:2 * a_dim].set(params["wls"])
    bh = jnp.zeros((1, head_pad), jnp.float32)
    bh = bh.at[:, :a_dim].set(params["bmu"]).at[:, a_dim:2 * a_dim].set(params["bls"])

    # Optional bf16 MXU operands (v6e/v7x); biases & LN params stay f32.
    w1 = params["w1"].astype(matmul_dtype)
    w2 = params["w2"].astype(matmul_dtype)
    wh = wh.astype(matmul_dtype)

    # Batch tiling: large batches use tile_b-row tiles (pipelined, parallel
    # grid axis); tiny batches collapse to one small sublane-aligned tile.
    tb = min(tile_b, _round_up(B, 8))
    Bp = _round_up(B, tb)
    s_p = s if Bp == B else jnp.pad(s, ((0, Bp - B), (0, 0)))
    s_p = s_p.astype(matmul_dtype)

    weights = (
        w1, params["b1"], params["g1"], params["be1"],
        w2, params["b2"], params["g2"], params["be2"],
        wh, bh,
    )

    def wspec(x):
        # Grid-invariant parameters: constant index_map -> stay VMEM-resident.
        # NOTE: at much larger hidden sizes, add pipeline_mode=pl.Buffered(1)
        # here to avoid double-buffering invariant weights (irrelevant at
        # hidden<=256, where all weights together are <1 MiB).
        return pl.BlockSpec(x.shape, lambda i: (0,) * x.ndim)

    out = pl.pallas_call(
        functools.partial(_policy_kernel, a_dim),
        out_shape=jax.ShapeDtypeStruct((Bp, head_pad), jnp.float32),
        grid=(Bp // tb,),
        in_specs=[pl.BlockSpec((tb, s_dim), lambda i: (i, 0))]
                 + [wspec(x) for x in weights],
        out_specs=pl.BlockSpec((tb, head_pad), lambda i: (i, 0)),
        compiler_params=pltpu.CompilerParams(
            dimension_semantics=("parallel",)),
    )(s_p, *weights)

    mu = out[:B, :a_dim]
    log_std = out[:B, a_dim:2 * a_dim]  # already clamped in-kernel
    return mu, log_std


def init_params(key, s_dim, a_dim, hidden):
    """Synthetic parameters matching nn.Linear / nn.LayerNorm shapes.

    Weights stored transposed vs PyTorch: (in_features, out_features).
    Biases / LN params kept as (1, dim) for a 2-D TPU-friendly layout.
    """
    ks = jax.random.split(key, 4)

    def lin(k, fan_in, fan_out):
        bound = 1.0 / jnp.sqrt(fan_in)
        kw, kb = jax.random.split(k)
        w = jax.random.uniform(kw, (fan_in, fan_out), jnp.float32, -bound, bound)
        b = jax.random.uniform(kb, (1, fan_out), jnp.float32, -bound, bound)
        return w, b

    w1, b1 = lin(ks[0], s_dim, hidden)
    w2, b2 = lin(ks[1], hidden, hidden)
    wmu, bmu = lin(ks[2], hidden, a_dim)
    wls, bls = lin(ks[3], hidden, a_dim)

    return {
        "w1": w1, "b1": b1,
        "g1": jnp.ones((1, hidden), jnp.float32), "be1": jnp.zeros((1, hidden), jnp.float32),
        "w2": w2, "b2": b2,
        "g2": jnp.ones((1, hidden), jnp.float32), "be2": jnp.zeros((1, hidden), jnp.float32),
        "wmu": wmu, "bmu": bmu,
        "wls": wls, "bls": bls,
    }


def _reference(s, p):
    h = s @ p["w1"] + p["b1"]
    m = h.mean(-1, keepdims=True); v = ((h - m) ** 2).mean(-1, keepdims=True)
    h = ((h - m) / jnp.sqrt(v + LN_EPS)) * p["g1"] + p["be1"]
    h = h * jax.nn.sigmoid(h)
    h = h @ p["w2"] + p["b2"]
    m = h.mean(-1, keepdims=True); v = ((h - m) ** 2).mean(-1, keepdims=True)
    h = ((h - m) / jnp.sqrt(v + LN_EPS)) * p["g2"] + p["be2"]
    h = h * jax.nn.sigmoid(h)
    mu = h @ p["wmu"] + p["bmu"]
    ls = jnp.clip(h @ p["wls"] + p["bls"], LOG_STD_MIN, LOG_STD_MAX)
    return mu, ls


if __name__ == "__main__":
    S_DIM, A_DIM, HIDDEN = 32, 8, 128

    key = jax.random.PRNGKey(0)
    k_s1, k_s2, k_p = jax.random.split(key, 3)
    params = init_params(k_p, S_DIM, A_DIM, HIDDEN)

    # 1) Small batch (grid=(1,)), exact f32 path.
    s_small = jax.random.normal(k_s1, (8, S_DIM), jnp.float32)
    mu, log_std = gaussian_policy_forward(s_small, params)
    jax.block_until_ready((mu, log_std))
    mu_r, ls_r = _reference(s_small, params)
    assert jnp.allclose(mu, mu_r, atol=1e-4, rtol=1e-4)
    assert jnp.allclose(log_std, ls_r, atol=1e-4, rtol=1e-4)

    # 2) Larger batch exercising batch tiling (grid=(2,), parallel grid axis).
    s_big = jax.random.normal(k_s2, (512, S_DIM), jnp.float32)
    mu, log_std = gaussian_policy_forward(s_big, params, tile_b=256)
    jax.block_until_ready((mu, log_std))
    mu_r, ls_r = _reference(s_big, params)
    assert jnp.allclose(mu, mu_r, atol=1e-4, rtol=1e-4)
    assert jnp.allclose(log_std, ls_r, atol=1e-4, rtol=1e-4)

    # 3) bf16 MXU operands (v6e/v7x fast path), f32 accumulation + f32 LN/SiLU.
    mu_b, ls_b = gaussian_policy_forward(s_big, params, tile_b=256,
                                         matmul_dtype=jnp.bfloat16)
    jax.block_until_ready((mu_b, ls_b))
    assert jnp.allclose(mu_b, mu_r, atol=0.25, rtol=0.25)
    assert jnp.allclose(ls_b, ls_r, atol=0.25, rtol=0.25)

    # TODO(synk): sample() (tanh-squashed Gaussian + log-prob) is stochastic and
    # left outside the kernel; only the deterministic forward() is implemented.
    print("KERNEL_OK")
</pallas_src>

<mosaic_0001>
module attributes {stable_mosaic.version = 11 : i64} {
  func.func @_policy_kernel(%arg0: i32, %arg1: memref<8x32xf32, #tpu.memory_space<vmem>>, %arg2: memref<32x128xf32, #tpu.memory_space<vmem>>, %arg3: memref<1x128xf32, #tpu.memory_space<vmem>>, %arg4: memref<1x128xf32, #tpu.memory_space<vmem>>, %arg5: memref<1x128xf32, #tpu.memory_space<vmem>>, %arg6: memref<128x128xf32, #tpu.memory_space<vmem>>, %arg7: memref<1x128xf32, #tpu.memory_space<vmem>>, %arg8: memref<1x128xf32, #tpu.memory_space<vmem>>, %arg9: memref<1x128xf32, #tpu.memory_space<vmem>>, %arg10: memref<128x128xf32, #tpu.memory_space<vmem>>, %arg11: memref<1x128xf32, #tpu.memory_space<vmem>>, %arg12: memref<8x128xf32, #tpu.memory_space<vmem>>) attributes {dimension_semantics = [#tpu.dimension_semantics<parallel>], iteration_bounds = array<i64: 1>, scalar_prefetch = 0 : i64, scratch_operands = 0 : i64, tpu.core_type = #tpu.core_type<tc>, window_params = [{transform_indices = @transform_0, window_bounds = array<i64: 8, 32>}, {pipeline_mode = #tpu.pipeline_mode<synchronous>, transform_indices = @transform_1, window_bounds = array<i64: 32, 128>}, {pipeline_mode = #tpu.pipeline_mode<synchronous>, transform_indices = @transform_2, window_bounds = array<i64: 1, 128>}, {pipeline_mode = #tpu.pipeline_mode<synchronous>, transform_indices = @transform_3, window_bounds = array<i64: 1, 128>}, {pipeline_mode = #tpu.pipeline_mode<synchronous>, transform_indices = @transform_4, window_bounds = array<i64: 1, 128>}, {pipeline_mode = #tpu.pipeline_mode<synchronous>, transform_indices = @transform_5, window_bounds = array<i64: 128, 128>}, {pipeline_mode = #tpu.pipeline_mode<synchronous>, transform_indices = @transform_6, window_bounds = array<i64: 1, 128>}, {pipeline_mode = #tpu.pipeline_mode<synchronous>, transform_indices = @transform_7, window_bounds = array<i64: 1, 128>}, {pipeline_mode = #tpu.pipeline_mode<synchronous>, transform_indices = @transform_8, window_bounds = array<i64: 1, 128>}, {pipeline_mode = #tpu.pipeline_mode<synchronous>, transform_indices = @transform_9, window_bounds = array<i64: 128, 128>}, {pipeline_mode = #tpu.pipeline_mode<synchronous>, transform_indices = @transform_10, window_bounds = array<i64: 1, 128>}, {transform_indices = @transform_11, window_bounds = array<i64: 8, 128>}]} {
    %c0 = arith.constant 0 : index
    %c0_0 = arith.constant 0 : index
    %0 = vector.load %arg1[%c0, %c0_0] : memref<8x32xf32, #tpu.memory_space<vmem>>, vector<8x32xf32>
    %c0_1 = arith.constant 0 : index
    %c0_2 = arith.constant 0 : index
    %1 = vector.load %arg2[%c0_1, %c0_2] : memref<32x128xf32, #tpu.memory_space<vmem>>, vector<32x128xf32>
    %cst = arith.constant dense<0.000000e+00> : vector<8x128xf32>
    %2 = tpu.matmul %0, %1, %cst {dimension_numbers = #tpu.dot_dimension_numbers<[1], [0], [0], [1], [0, 0, 1, 1], [], []>} : vector<8x32xf32>, vector<32x128xf32>, vector<8x128xf32> -> vector<8x128xf32>
    %c0_3 = arith.constant 0 : index
    %c0_4 = arith.constant 0 : index
    %3 = vector.load %arg3[%c0_3, %c0_4] : memref<1x128xf32, #tpu.memory_space<vmem>>, vector<1x128xf32>
    %4 = vector.broadcast %3 : vector<1x128xf32> to vector<8x128xf32>
    %5 = arith.addf %2, %4 : vector<8x128xf32>
    %c0_5 = arith.constant 0 : index
    %c0_6 = arith.constant 0 : index
    %6 = vector.load %arg4[%c0_5, %c0_6] : memref<1x128xf32, #tpu.memory_space<vmem>>, vector<1x128xf32>
    %c0_7 = arith.constant 0 : index
    %c0_8 = arith.constant 0 : index
    %7 = vector.load %arg5[%c0_7, %c0_8] : memref<1x128xf32, #tpu.memory_space<vmem>>, vector<1x128xf32>
    %cst_9 = arith.constant dense<0.000000e+00> : vector<8xf32>
    %8 = vector.multi_reduction <add>, %5, %cst_9 [1] : vector<8x128xf32> to vector<8xf32>
    %9 = vector.shape_cast %8 : vector<8xf32> to vector<8x1xf32>
    %10 = arith.mulf %5, %5 : vector<8x128xf32>
    %cst_10 = arith.constant dense<0.000000e+00> : vector<8xf32>
    %11 = vector.multi_reduction <add>, %10, %cst_10 [1] : vector<8x128xf32> to vector<8xf32>
    %12 = vector.shape_cast %11 : vector<8xf32> to vector<8x1xf32>
    %cst_11 = arith.constant 7.812500e-03 : f32
    %13 = vector.broadcast %cst_11 : f32 to vector<8x1xf32>
    %14 = arith.mulf %9, %13 : vector<8x1xf32>
    %cst_12 = arith.constant 7.812500e-03 : f32
    %15 = vector.broadcast %cst_12 : f32 to vector<8x1xf32>
    %16 = arith.mulf %12, %15 : vector<8x1xf32>
    %17 = arith.mulf %14, %14 : vector<8x1xf32>
    %18 = arith.subf %16, %17 : vector<8x1xf32>
    %cst_13 = arith.constant 0.000000e+00 : f32
    %19 = vector.broadcast %cst_13 : f32 to vector<8x1xf32>
    %20 = arith.maximumf %18, %19 : vector<8x1xf32>
    %21 = vector.broadcast %14 : vector<8x1xf32> to vector<8x128xf32>
    %22 = arith.subf %5, %21 : vector<8x128xf32>
    %cst_14 = arith.constant 9.99999974E-6 : f32
    %23 = vector.broadcast %cst_14 : f32 to vector<8x1xf32>
    %24 = arith.addf %20, %23 : vector<8x1xf32>
    %25 = math.rsqrt %24 : vector<8x1xf32>
    %26 = vector.broadcast %25 : vector<8x1xf32> to vector<8x128xf32>
    %27 = arith.mulf %22, %26 : vector<8x128xf32>
    %28 = vector.broadcast %6 : vector<1x128xf32> to vector<8x128xf32>
    %29 = arith.mulf %27, %28 : vector<8x128xf32>
    %30 = vector.broadcast %7 : vector<1x128xf32> to vector<8x128xf32>
    %31 = arith.addf %29, %30 : vector<8x128xf32>
    %32 = arith.negf %31 : vector<8x128xf32>
    %33 = math.exp %32 : vector<8x128xf32>
    %cst_15 = arith.constant 1.000000e+00 : f32
    %34 = vector.broadcast %cst_15 : f32 to vector<8x128xf32>
    %35 = arith.addf %34, %33 : vector<8x128xf32>
    %36 = arith.divf %34, %35 : vector<8x128xf32>
    %37 = arith.mulf %31, %36 : vector<8x128xf32>
    %c0_16 = arith.constant 0 : index
    %c0_17 = arith.constant 0 : index
    %38 = vector.load %arg6[%c0_16, %c0_17] : memref<128x128xf32, #tpu.memory_space<vmem>>, vector<128x128xf32>
    %cst_18 = arith.constant dense<0.000000e+00> : vector<8x128xf32>
    %39 = tpu.matmul %37, %38, %cst_18 {dimension_numbers = #tpu.dot_dimension_numbers<[1], [0], [0], [1], [0, 0, 1, 1], [], []>} : vector<8x128xf32>, vector<128x128xf32>, vector<8x128xf32> -> vector<8x128xf32>
    %c0_19 = arith.constant 0 : index
    %c0_20 = arith.constant 0 : index
    %40 = vector.load %arg7[%c0_19, %c0_20] : memref<1x128xf32, #tpu.memory_space<vmem>>, vector<1x128xf32>
    %41 = vector.broadcast %40 : vector<1x128xf32> to vector<8x128xf32>
    %42 = arith.addf %39, %41 : vector<8x128xf32>
    %c0_21 = arith.constant 0 : index
    %c0_22 = arith.constant 0 : index
    %43 = vector.load %arg8[%c0_21, %c0_22] : memref<1x128xf32, #tpu.memory_space<vmem>>, vector<1x128xf32>
    %c0_23 = arith.constant 0 : index
    %c0_24 = arith.constant 0 : index
    %44 = vector.load %arg9[%c0_23, %c0_24] : memref<1x128xf32, #tpu.memory_space<vmem>>, vector<1x128xf32>
    %cst_25 = arith.constant dense<0.000000e+00> : vector<8xf32>
    %45 = vector.multi_reduction <add>, %42, %cst_25 [1] : vector<8x128xf32> to vector<8xf32>
    %46 = vector.shape_cast %45 : vector<8xf32> to vector<8x1xf32>
    %47 = arith.mulf %42, %42 : vector<8x128xf32>
    %cst_26 = arith.constant dense<0.000000e+00> : vector<8xf32>
    %48 = vector.multi_reduction <add>, %47, %cst_26 [1] : vector<8x128xf32> to vector<8xf32>
    %49 = vector.shape_cast %48 : vector<8xf32> to vector<8x1xf32>
    %cst_27 = arith.constant 7.812500e-03 : f32
    %50 = vector.broadcast %cst_27 : f32 to vector<8x1xf32>
    %51 = arith.mulf %46, %50 : vector<8x1xf32>
    %cst_28 = arith.constant 7.812500e-03 : f32
    %52 = vector.broadcast %cst_28 : f32 to vector<8x1xf32>
    %53 = arith.mulf %49, %52 : vector<8x1xf32>
    %54 = arith.mulf %51, %51 : vector<8x1xf32>
    %55 = arith.subf %53, %54 : vector<8x1xf32>
    %cst_29 = arith.constant 0.000000e+00 : f32
    %56 = vector.broadcast %cst_29 : f32 to vector<8x1xf32>
    %57 = arith.maximumf %55, %56 : vector<8x1xf32>
    %58 = vector.broadcast %51 : vector<8x1xf32> to vector<8x128xf32>
    %59 = arith.subf %42, %58 : vector<8x128xf32>
    %cst_30 = arith.constant 9.99999974E-6 : f32
    %60 = vector.broadcast %cst_30 : f32 to vector<8x1xf32>
    %61 = arith.addf %57, %60 : vector<8x1xf32>
    %62 = math.rsqrt %61 : vector<8x1xf32>
    %63 = vector.broadcast %62 : vector<8x1xf32> to vector<8x128xf32>
    %64 = arith.mulf %59, %63 : vector<8x128xf32>
    %65 = vector.broadcast %43 : vector<1x128xf32> to vector<8x128xf32>
    %66 = arith.mulf %64, %65 : vector<8x128xf32>
    %67 = vector.broadcast %44 : vector<1x128xf32> to vector<8x128xf32>
    %68 = arith.addf %66, %67 : vector<8x128xf32>
    %69 = arith.negf %68 : vector<8x128xf32>
    %70 = math.exp %69 : vector<8x128xf32>
    %cst_31 = arith.constant 1.000000e+00 : f32
    %71 = vector.broadcast %cst_31 : f32 to vector<8x128xf32>
    %72 = arith.addf %71, %70 : vector<8x128xf32>
    %73 = arith.divf %71, %72 : vector<8x128xf32>
    %74 = arith.mulf %68, %73 : vector<8x128xf32>
    %c0_32 = arith.constant 0 : index
    %c0_33 = arith.constant 0 : index
    %75 = vector.load %arg10[%c0_32, %c0_33] : memref<128x128xf32, #tpu.memory_space<vmem>>, vector<128x128xf32>
    %cst_34 = arith.constant dense<0.000000e+00> : vector<8x128xf32>
    %76 = tpu.matmul %74, %75, %cst_34 {dimension_numbers = #tpu.dot_dimension_numbers<[1], [0], [0], [1], [0, 0, 1, 1], [], []>} : vector<8x128xf32>, vector<128x128xf32>, vector<8x128xf32> -> vector<8x128xf32>
    %c0_35 = arith.constant 0 : index
    %c0_36 = arith.constant 0 : index
    %77 = vector.load %arg11[%c0_35, %c0_36] : memref<1x128xf32, #tpu.memory_space<vmem>>, vector<1x128xf32>
    %78 = vector.broadcast %77 : vector<1x128xf32> to vector<8x128xf32>
    %79 = arith.addf %76, %78 : vector<8x128xf32>
    %80 = tpu.iota {dimensions = array<i32: 1>} : vector<8x128xi32>
    %c8_i32 = arith.constant 8 : i32
    %81 = vector.broadcast %c8_i32 : i32 to vector<8x128xi32>
    %82 = arith.cmpi sge, %80, %81 : vector<8x128xi32>
    %cst_37 = arith.constant -2.000000e+01 : f32
    %cst_38 = arith.constant 2.000000e+00 : f32
    %83 = vector.broadcast %cst_37 : f32 to vector<8x128xf32>
    %84 = arith.maximumf %83, %79 : vector<8x128xf32>
    %85 = vector.broadcast %cst_38 : f32 to vector<8x128xf32>
    %86 = arith.minimumf %85, %84 : vector<8x128xf32>
    %87 = arith.select %82, %86, %79 : vector<8x128xi1>, vector<8x128xf32>
    %c0_39 = arith.constant 0 : index
    %c0_40 = arith.constant 0 : index
    %88 = vector.load %arg12[%c0_39, %c0_40] : memref<8x128xf32, #tpu.memory_space<vmem>>, vector<8x128xf32>
    tpu.vector_store %arg12[%c0_39, %c0_40], %87 {strides = array<i32>} : memref<8x128xf32, #tpu.memory_space<vmem>>, vector<8x128xf32>,
    return
  }
  func.func @transform_0(%arg0: i32) -> (i32, i32) {
    %c0_i32 = arith.constant 0 : i32
    %c0_i32_0 = arith.constant 0 : i32
    return %arg0, %c0_i32 : i32, i32
  }
  func.func @transform_1(%arg0: i32) -> (i32, i32) {
    %c0_i32 = arith.constant 0 : i32
    %c0_i32_0 = arith.constant 0 : i32
    %c0_i32_1 = arith.constant 0 : i32
    return %c0_i32, %c0_i32_0 : i32, i32
  }
  func.func @transform_2(%arg0: i32) -> (i32, i32) {
    %c0_i32 = arith.constant 0 : i32
    %c0_i32_0 = arith.constant 0 : i32
    %c0_i32_1 = arith.constant 0 : i32
    return %c0_i32, %c0_i32_0 : i32, i32
  }
  func.func @transform_3(%arg0: i32) -> (i32, i32) {
    %c0_i32 = arith.constant 0 : i32
    %c0_i32_0 = arith.constant 0 : i32
    %c0_i32_1 = arith.constant 0 : i32
    return %c0_i32, %c0_i32_0 : i32, i32
  }
  func.func @transform_4(%arg0: i32) -> (i32, i32) {
    %c0_i32 = arith.constant 0 : i32
    %c0_i32_0 = arith.constant 0 : i32
    %c0_i32_1 = arith.constant 0 : i32
    return %c0_i32, %c0_i32_0 : i32, i32
  }
  func.func @transform_5(%arg0: i32) -> (i32, i32) {
    %c0_i32 = arith.constant 0 : i32
    %c0_i32_0 = arith.constant 0 : i32
    %c0_i32_1 = arith.constant 0 : i32
    return %c0_i32, %c0_i32_0 : i32, i32
  }
  func.func @transform_6(%arg0: i32) -> (i32, i32) {
    %c0_i32 = arith.constant 0 : i32
    %c0_i32_0 = arith.constant 0 : i32
    %c0_i32_1 = arith.constant 0 : i32
    return %c0_i32, %c0_i32_0 : i32, i32
  }
  func.func @transform_7(%arg0: i32) -> (i32, i32) {
    %c0_i32 = arith.constant 0 : i32
    %c0_i32_0 = arith.constant 0 : i32
    %c0_i32_1 = arith.constant 0 : i32
    return %c0_i32, %c0_i32_0 : i32, i32
  }
  func.func @transform_8(%arg0: i32) -> (i32, i32) {
    %c0_i32 = arith.constant 0 : i32
    %c0_i32_0 = arith.constant 0 : i32
    %c0_i32_1 = arith.constant 0 : i32
    return %c0_i32, %c0_i32_0 : i32, i32
  }
  func.func @transform_9(%arg0: i32) -> (i32, i32) {
    %c0_i32 = arith.constant 0 : i32
    %c0_i32_0 = arith.constant 0 : i32
    %c0_i32_1 = arith.constant 0 : i32
    return %c0_i32, %c0_i32_0 : i32, i32
  }
  func.func @transform_10(%arg0: i32) -> (i32, i32) {
    %c0_i32 = arith.constant 0 : i32
    %c0_i32_0 = arith.constant 0 : i32
    %c0_i32_1 = arith.constant 0 : i32
    return %c0_i32, %c0_i32_0 : i32, i32
  }
  func.func @transform_11(%arg0: i32) -> (i32, i32) {
    %c0_i32 = arith.constant 0 : i32
    %c0_i32_0 = arith.constant 0 : i32
    return %arg0, %c0_i32 : i32, i32
  }
}

</mosaic_0001>

<bundles_post_ra>
// kernel: tpu_custom_call.1
= control target key start
LH: loop header
LB: loop body
LE: loop exit
PB: predicated region body
PF: predicated region fallthrough
CT: control target
= control target key end

     0   :  { %16 = vsyncpa [#allocation3], 0  ;;  %s967_s0 = inlined_call_operand.hbm [shape: f32[8,32], index: 0, kind: input, shape index: {}]   ;;  %s968_s1 = inlined_call_operand.hbm [shape: f32[32,128], index: 1, kind: input, shape index: {}]   ;;  %s969_s2 = inlined_call_operand.vmem [shape: f32[1,128], index: 2, kind: input, shape index: {}]   ;;  %s970_s3 = inlined_call_operand.vmem [shape: f32[1,128], index: 3, kind: input, shape index: {}]   ;;  %s971_s4 = inlined_call_operand.vmem [shape: f32[1,128], index: 4, kind: input, shape index: {}]   ;;  %s972_s5 = inlined_call_operand.hbm [shape: f32[128,128], index: 5, kind: input, shape index: {}]   ;;  %s973_s6 = inlined_call_operand.vmem [shape: f32[1,128], index: 6, kind: input, shape index: {}]   ;;  %s974_s7 = inlined_call_operand.vmem [shape: f32[1,128], index: 7, kind: input, shape index: {}]   ;;  %s975_s8 = inlined_call_operand.vmem [shape: f32[1,128], index: 8, kind: input, shape index: {}]   ;;  %s976_s9 = inlined_call_operand.hbm [shape: f32[128,128], index: 9, kind: input, shape index: {}]   ;;  %s977_s10 = inlined_call_operand.vmem [shape: f32[1,128], index: 10, kind: input, shape index: {}]   ;;  %s978_s11 = inlined_call_operand.hbm [shape: f32[8,128], index: 11, kind: output, shape index: {}]  }
   0x1   :  { %17 = vsyncpa [#allocation6], 0 }
   0x2   :  { %18 = vsyncpa [#allocation9], 0 }
   0x3   :  { %19 = vsyncpa [#allocation4], 0  ;;  %s786_s17 = smov [#allocation5]   ;;  %s668_s21 = scalar_lea.hbm %s968_s1, 512 }
   0x4   :  { %s35_s18 = sshll.u32 %s786_s17, 4  ;;  %p669_p0 = scmp.ne.s32.totalorder %s968_s1, %s668_s21  ;;  %s36_s18 = int_to_ptr.vmem [resolvable:$true] %s35_s18 }
   0x5   :  { %p672_p1 = scmp.lt.u32.totalorder %s668_s21, %s968_s1 }
   0x7   :  { %p674_p2 = pnand %p672_p1, %p669_p0 }
   0x9   :  { %677 = shalt.err (!%p674_p2)
}
   0xa   :  { %s678_s26 = scalar_lea.vmem %s36_s18, 512  ;;  %p683_p4 = scmp.lt.s32.totalorder %s36_s18, %s36_s18 }
   0xb   :  { %p679_p3 = scmp.ne.s32.totalorder %s36_s18, %s678_s26  ;;  %p684_p5 = scmp.lt.s32.totalorder %s678_s26, %s678_s26 }
   0xd   :  { %p685_p6 = por %p684_p5, %p683_p4 }
   0xf   :  { %p686_p7 = pnand %p685_p6, %p679_p3 }
  0x11   :  { %689 = shalt.err (!%p686_p7)
}
  0x12   :  { %s787_s27 = smov 128   ;;  %s788_s28 = smov 8  }
  0x13   :  { %41 = dma.hbm_to_vmem [thread:$0]  %s968_s1, 512, %s36_s18, [#allocation6], %s787_s27, %s787_s27, %s788_s28  }
  0x14   :  { %s789_s12 = smov [#allocation2]   ;;  %s790_s14 = smov [#allocation7]  }
  0x15   :  { %s26_s13 = sshll.u32 %s789_s12, 4  ;;  %s53_s15 = sshll.u32 %s790_s14, 4  ;;  %s27_s13 = int_to_ptr.vmem [resolvable:$true] %s26_s13  ;;  %s54_s15 = int_to_ptr.vmem [resolvable:$true] %s53_s15 }
  0x16   :  { %s690_s19 = scalar_lea.hbm %s967_s0, 128 }
  0x17   :  { %p691_p8 = scmp.ne.s32.totalorder %s967_s0, %s690_s19  ;;  %p694_p9 = scmp.lt.u32.totalorder %s690_s19, %s967_s0 }
  0x19   :  { %p696_p10 = pnand %p694_p9, %p691_p8 }
  0x1b   :  { %699 = shalt.err (!%p696_p10)
}
  0x1c   :  { %s700_s1 = scalar_lea.vmem %s27_s13, 128  ;;  %p705_p12 = scmp.lt.s32.totalorder %s27_s13, %s27_s13 }
  0x1d   :  { %p701_p11 = scmp.ne.s32.totalorder %s27_s13, %s700_s1  ;;  %p706_p13 = scmp.lt.s32.totalorder %s700_s1, %s700_s1 }
  0x1f   :  { %p707_p0 = por %p706_p13, %p705_p12 }
  0x21   :  { %p708_p1 = pnand %p707_p0, %p701_p11 }
  0x23   :  { %711 = shalt.err (!%p708_p1)
}
  0x24   :  { %29 = dma.hbm_to_vmem [thread:$0]  %s967_s0, 128, %s27_s13, [#allocation3]  }
  0x25   :  { %s712_s29 = scalar_lea.hbm %s972_s5, 2048 }
  0x26   :  { %p713_p2 = scmp.ne.s32.totalorder %s972_s5, %s712_s29  ;;  %p716_p3 = scmp.lt.u32.totalorder %s712_s29, %s972_s5 }
  0x28   :  { %p718_p4 = pnand %p716_p3, %p713_p2 }
  0x2a   :  { %721 = shalt.err (!%p718_p4)
}
  0x2b   :  { %s722_s17 = scalar_lea.vmem %s54_s15, 2048  ;;  %p727_p6 = scmp.lt.s32.totalorder %s54_s15, %s54_s15 }
  0x2c   :  { %p723_p5 = scmp.ne.s32.totalorder %s54_s15, %s722_s17  ;;  %p728_p7 = scmp.lt.s32.totalorder %s722_s17, %s722_s17 }
  0x2e   :  { %p729_p8 = por %p728_p7, %p727_p6 }
  0x30   :  { %p730_p9 = pnand %p729_p8, %p723_p5 }
  0x32   :  { %733 = shalt.err (!%p730_p9)
}
  0x33   :  { %59 = dma.hbm_to_vmem [thread:$0]  %s972_s5, 2048, %s54_s15, [#allocation6], %s787_s27, %s787_s27, %s788_s28  }
  0x34   :  { %s791_s19 = smov [#allocation8]   ;;  %s734_s23 = scalar_lea.hbm %s976_s9, 2048 }
  0x35   :  { %s71_s20 = sshll.u32 %s791_s19, 4  ;;  %p735_p10 = scmp.ne.s32.totalorder %s976_s9, %s734_s23  ;;  %s72_s20 = int_to_ptr.vmem [resolvable:$true] %s71_s20 }
  0x36   :  { %p738_p11 = scmp.lt.u32.totalorder %s734_s23, %s976_s9 }
  0x38   :  { %p740_p12 = pnand %p738_p11, %p735_p10 }
  0x3a   :  { %743 = shalt.err (!%p740_p12)
}
  0x3b   :  { %s744_s26 = scalar_lea.vmem %s72_s20, 2048  ;;  %p749_p0 = scmp.lt.s32.totalorder %s72_s20, %s72_s20 }
  0x3c   :  { %p745_p13 = scmp.ne.s32.totalorder %s72_s20, %s744_s26  ;;  %p750_p1 = scmp.lt.s32.totalorder %s744_s26, %s744_s26 }
  0x3e   :  { %p751_p2 = por %p750_p1, %p749_p0 }
  0x40   :  { %p752_p3 = pnand %p751_p2, %p745_p13 }
  0x42   :  { %755 = shalt.err (!%p752_p3)
}
  0x43   :  { %77 = dma.hbm_to_vmem [thread:$0]  %s976_s9, 2048, %s72_s20, [#allocation9], %s787_s27, %s787_s27, %s788_s28  }
  0x44   :  { %778 = dma.done.wait [#allocation3], 128  }
  0x45   :  { %779 = vsyncadd [#allocation3], 4294967168 }
  0x46   :  { %780 = dma.done.wait [#allocation6], 2560  }
  0x47   :  { %781 = vsyncadd [#allocation6], 4294964736 }
  0x48   :  { %782 = dma.done.wait [#allocation9], 2048  }
  0x49   :  { %783 = vsyncadd [#allocation9], 4294965248  ;;  %v792_v0 = vmov 0.0|0.0   ;;  %vm793_vm0 = vmmov 0   ;;  %v794_v1 = vmov 0.0   ;;  %v93_v2 = vld [vmem:[#allocation5] sm:$0xff] }
  0x4a   :  { %592 = vmatprep.subr.bf16.mxu0 %v792_v0  ;;  %519 = vmatprep.mubr.msk.f32.mxu0 %vm793_vm0, %v794_v1  ;;  %v94_v3 = vld [vmem:[#allocation5 + $0x8] sm:$0xff]  ;;  %v95_v4 = vld [vmem:[#allocation5 + $0x10] sm:$0xff]  ;;  %v96_v6 = vld [vmem:[#allocation5 + $0x18] sm:$0xff]  ;;  %vm104_vm1 = vcmask 261120  }
  0x4b   :  { %598 = vmatprep.subr.bf16.mxu1 %v792_v0  ;;  %554 = vmatprep.mubr.msk.f32.mxu1 %vm793_vm0, %v794_v1  ;;  %v593_v5 = vpack.c.bf16 %v94_v3, %v93_v2  ;;  %v596_v7 = vpack.c.bf16 %v96_v6, %v95_v4  ;;  %v92_v8 = vld [vmem:[#allocation2] sm:$0xff]  ;;  %v215_v14 = vld [vmem:[#allocation7] sm:$0xff]  ;;  %v216_v15 = vld [vmem:[#allocation7 + $0x8] sm:$0xff] }
  0x4c   :  { %v462_v9 = vld [vmem:[%s969_s2] ss:$0 sm:$0xff]  ;;  %v217_v16 = vld [vmem:[#allocation7 + $0x10] sm:$0xff]  ;;  %v599_v17 = vpack.c.bf16 %v216_v15, %v215_v14  ;;  %v219_v20 = vld [vmem:[#allocation7 + $0x20] sm:$0xff] }
  0x4d   :  { %594 = vmatpush3.bf16.msra.mxu0 %v593_v5  ;;  %v218_v18 = vld [vmem:[#allocation7 + $0x18] sm:$0xff]  ;;  %v220_v21 = vld [vmem:[#allocation7 + $0x28] sm:$0xff]  ;;  %v221_v23 = vld [vmem:[#allocation7 + $0x30] sm:$0xff] }
  0x4e   :  { %595 = vmatprep.subr.bf16.mxu0 %v792_v0  ;;  %600 = vmatpush3.bf16.msra.mxu1 %v599_v17  ;;  %v602_v19 = vpack.c.bf16 %v218_v18, %v217_v16  ;;  %v605_v22 = vpack.c.bf16 %v220_v21, %v219_v20  ;;  %v222_v24 = vld [vmem:[#allocation7 + $0x38] sm:$0xff]  ;;  %v223_v26 = vld [vmem:[#allocation7 + $0x40] sm:$0xff]  ;;  %v224_v27 = vld [vmem:[#allocation7 + $0x48] sm:$0xff] }
  0x4f   :  { %601 = vmatprep.subr.bf16.mxu1 %v792_v0  ;;  %v608_v25 = vpack.c.bf16 %v222_v24, %v221_v23  ;;  %v611_v28 = vpack.c.bf16 %v224_v27, %v223_v26  ;;  %v225_v29 = vld [vmem:[#allocation7 + $0x50] sm:$0xff]  ;;  %v226_v30 = vld [vmem:[#allocation7 + $0x58] sm:$0xff]  ;;  %v227_v32 = vld [vmem:[#allocation7 + $0x60] sm:$0xff] }
  0x50   :  { %v614_v31 = vpack.c.bf16 %v226_v30, %v225_v29  ;;  %v228_v33 = vld [vmem:[#allocation7 + $0x68] sm:$0xff]  ;;  %v229_v35 = vld [vmem:[#allocation7 + $0x70] sm:$0xff]  ;;  %v230_v36 = vld [vmem:[#allocation7 + $0x78] sm:$0xff] }
  0x51   :  { %597 = vmatpush3.bf16.msra.mxu0 %v596_v7  ;;  %v617_v34 = vpack.c.bf16 %v228_v33, %v227_v32  ;;  %v620_v37 = vpack.c.bf16 %v230_v36, %v229_v35  ;;  %v464_v48 = vld [vmem:[%s970_s3] ss:$0 sm:$0xff]  ;;  %v345_v63 = vld [vmem:[#allocation8] sm:$0xff]  ;;  %v347_v2 = vld [vmem:[#allocation8 + $0x10] sm:$0xff] }
  0x52   :  { %622 = vmatprep.subr.bf16.mxu0 %v792_v0  ;;  %603 = vmatpush3.bf16.msra.mxu1 %v602_v19  ;;  %v465_v50 = vld [vmem:[%s971_s4] ss:$0 sm:$0xff]  ;;  %v349_v6 = vld [vmem:[#allocation8 + $0x20] sm:$0xff]  ;;  %v350_v7 = vld [vmem:[#allocation8 + $0x28] sm:$0xff] }
  0x53   :  { %604 = vmatprep.subr.bf16.mxu1 %v792_v0  ;;  %v467_v58 = vld [vmem:[%s973_s6] ss:$0 sm:$0xff]  ;;  %v355_v15 = vld [vmem:[#allocation8 + $0x50] sm:$0xff]  ;;  %v357_v18 = vld [vmem:[#allocation8 + $0x60] sm:$0xff] }
  0x54   :  { %520 = vmatmul.mubr.msk.f32.vlgmr.msra.gmra.mrb[0].mxu0 %vm104_vm1, %v92_v8  ;;  %v348_v4 = vld [vmem:[#allocation8 + $0x18] sm:$0xff]  ;;  %v629_v8 = vpack.c.bf16 %v350_v7, %v349_v6  ;;  %v358_v19 = vld [vmem:[#allocation8 + $0x68] sm:$0xff]  ;;  %v359_v21 = vld [vmem:[#allocation8 + $0x70] sm:$0xff] }
  0x55   :  { %589 = vmatprep.mubr.msk.f32.mxu0 %vm793_vm0, %v794_v1  ;;  %v346_v1 = vld [vmem:[#allocation8 + $0x8] sm:$0xff]  ;;  %v626_v5 = vpack.c.bf16 %v348_v4, %v347_v2  ;;  %v356_v16 = vld [vmem:[#allocation8 + $0x58] sm:$0xff]  ;;  %v641_v20 = vpack.c.bf16 %v358_v19, %v357_v18 }
  0x56   :  { %606 = vmatpush3.bf16.msra.mxu1 %v605_v22  ;;  %v623_v3 = vpack.c.bf16 %v346_v1, %v345_v63  ;;  %v638_v17 = vpack.c.bf16 %v356_v16, %v355_v15  ;;  %v360_v22 = vld [vmem:[#allocation8 + $0x78] sm:$0xff] }
  0x57   :  { %607 = vmatprep.subr.bf16.mxu1 %v792_v0  ;;  %v644_v23 = vpack.c.bf16 %v360_v22, %v359_v21 }
  0x58   :  { %624 = vmatpush3.bf16.msra.mxu0 %v623_v3 }
  0x59   :  { %625 = vmatprep.subr.bf16.mxu0 %v792_v0 }
  0x5a   :  { %609 = vmatpush3.bf16.msra.mxu1 %v608_v25 }
  0x5b   :  { %610 = vmatprep.subr.bf16.mxu1 %v792_v0 }
  0x5c   :  { %627 = vmatpush3.bf16.msra.mxu0 %v626_v5 }
  0x5d   :  { %628 = vmatprep.subr.bf16.mxu0 %v792_v0 }
  0x5e   :  { %612 = vmatpush3.bf16.msra.mxu1 %v611_v28 }
  0x5f   :  { %613 = vmatprep.subr.bf16.mxu1 %v792_v0 }
  0x60   :  { %630 = vmatpush3.bf16.msra.mxu0 %v629_v8 }
  0x61   :  { %631 = vmatprep.subr.bf16.mxu0 %v792_v0 }
  0x62   :  { %615 = vmatpush3.bf16.msra.mxu1 %v614_v31 }
  0x63   :  { %616 = vmatprep.subr.bf16.mxu1 %v792_v0 }
  0x66   :  { %618 = vmatpush3.bf16.msra.mxu1 %v617_v34  ;;  %v468_v34 = vld [vmem:[%s974_s7] ss:$0 sm:$0xff]  ;;  %s795_s7 = smov [#allocation10]  }
  0x67   :  { %619 = vmatprep.subr.bf16.mxu1 %v792_v0 }
  0x6a   :  { %621 = vmatpush3.bf16.msra.mxu1 %v620_v37 }
 0x127   :  { %v174_v10 = vpop.f32.mrb[0].mxu0 }
 0x128   :  { %v175_v11 = vadd.f32 %v462_v9, %v174_v10  ;;  %v521_v12 = vpop.f32.mrb[1].mxu0  ;;  %v351_v9 = vld [vmem:[#allocation8 + $0x30] sm:$0xff]  ;;  %v352_v10 = vld [vmem:[#allocation8 + $0x38] sm:$0xff] }
 0x129   :  { %v353_v12 = vld [vmem:[#allocation8 + $0x40] sm:$0xff] }
 0x12a   :  { %180 = vadd.xlane.f32.xlu0 %v175_v11  ;;  %v182_v13 = vmul.f32 %v175_v11, %v175_v11 }
 0x12e   :  { %183 = vadd.xlane.f32.xlu0 %v182_v13  ;;  %v354_v13 = vld [vmem:[#allocation8 + $0x48] sm:$0xff] }
 0x12f   :  { %v635_v14 = vpack.c.bf16 %v354_v13, %v353_v12 }
 0x1b7   :  { %v181_v38 = vpop.xlane.xlu0 %180 }
 0x1b8   :  { %v185_v39 = vmul.f32 0.0078125, %v181_v38 }
 0x1ba   :  { %v187_v41 = vmul.f32 %v185_v39, %v185_v39  ;;  %v190_v46 = vsub.f32 %v175_v11, %v185_v39  ;;  %v632_v11 = vpack.c.bf16 %v352_v10, %v351_v9 }
 0x1bb   :  { %v184_v40 = vpop.xlane.xlu0 %183 }
 0x1bc   :  { %v186_v42 = vmul.f32 0.0078125, %v184_v40  ;;  %633 = vmatpush3.bf16.msra.mxu0 %v632_v11 }
 0x1bd   :  { %634 = vmatprep.subr.bf16.mxu0 %v792_v0 }
 0x1be   :  { %v188_v43 = vsub.f32 %v186_v42, %v187_v41 }
 0x1c0   :  { %v189_v44 = vmax.f32 %v188_v43, 0.0  ;;  %636 = vmatpush3.bf16.msra.mxu0 %v635_v14  ;;  %v438_v43 = vlaneseq }
 0x1c1   :  { %637 = vmatprep.subr.bf16.mxu0 %v792_v0 }
 0x1c2   :  { %v191_v45 = vadd.f32 1e-05, %v189_v44  ;;  %v471_v44 = vld [vmem:[%s977_s10] ss:$0 sm:$0xff] }
 0x1c4   :  { %656 = vrsqrt.f32 %v191_v45  ;;  %639 = vmatpush3.bf16.msra.mxu0 %v638_v17 }
 0x1c5   :  { %640 = vmatprep.subr.bf16.mxu0 %v792_v0 }
 0x1c8   :  { %642 = vmatpush3.bf16.msra.mxu0 %v641_v20 }
 0x1c9   :  { %643 = vmatprep.subr.bf16.mxu0 %v792_v0  ;;  %v469_v0 = vld [vmem:[%s975_s8] ss:$0 sm:$0xff]  ;;  %s451_s8 = sshll.u32 %s795_s7, 4  ;;  %s452_s8 = int_to_ptr.vmem [resolvable:$true] %s451_s8 }
 0x1ca   :  { %s756_s13 = scalar_lea.vmem %s452_s8, 128  ;;  %p761_p5 = scmp.lt.s32.totalorder %s452_s8, %s452_s8 }
 0x1cb   :  { %p757_p4 = scmp.ne.s32.totalorder %s452_s8, %s756_s13  ;;  %p762_p6 = scmp.lt.s32.totalorder %s756_s13, %s756_s13 }
 0x1cc   :  { %645 = vmatpush3.bf16.msra.mxu0 %v644_v23 }
 0x1cd   :  { %p763_p7 = por %p762_p6, %p761_p5 }
 0x1ce   :  { %v657_v47 = vpop.eup %656 }
 0x1cf   :  { %v193_v49 = vmul.f32 %v657_v47, %v190_v46  ;;  %v439_v46 = vand.u32 127, %v438_v43  ;;  %p764_p8 = pnand %p763_p7, %p757_p4 }
 0x1d1   :  { %v200_v51 = vmul.f32 %v464_v48, %v193_v49  ;;  %vm440_vm2 = vcmp.ge.s32.totalorder %v439_v46, 8 }
 0x1d3   :  { %v207_v52 = vadd.f32 %v465_v50, %v200_v51 }
 0x1d5   :  { %v466_v53 = vmul.f32 -1.442695, %v207_v52 }
 0x1d7   :  { %658 = vpow2.f32 %v466_v53 }
 0x1e1   :  { %v659_v54 = vpop.eup %658 }
 0x1e2   :  { %v211_v55 = vadd.f32 1.0, %v659_v54 }
 0x1e4   :  { %660 = vrcp.f32 %v211_v55 }
 0x1ee   :  { %v661_v56 = vpop.eup %660 }
 0x1ef   :  { %v214_v57 = vmul.f32 %v661_v56, %v207_v52 }
 0x1f1   :  { %555 = vmatmul.mubr.f32.vlgmr.msra.gmra.mrb[0].mxu1 %v214_v57 }
 0x2c4   :  { %v304_v59 = vpop.f32.mrb[0].mxu1 }
 0x2c5   :  { %v305_v60 = vadd.f32 %v467_v58, %v304_v59  ;;  %v556_v61 = vpop.f32.mrb[1].mxu1 }
 0x2c7   :  { %310 = vadd.xlane.f32.xlu1 %v305_v60  ;;  %v312_v62 = vmul.f32 %v305_v60, %v305_v60 }
 0x2cb   :  { %313 = vadd.xlane.f32.xlu1 %v312_v62 }
 0x354   :  { %v311_v24 = vpop.xlane.xlu1 %310 }
 0x355   :  { %v315_v25 = vmul.f32 0.0078125, %v311_v24 }
 0x357   :  { %v317_v27 = vmul.f32 %v315_v25, %v315_v25  ;;  %v320_v32 = vsub.f32 %v305_v60, %v315_v25 }
 0x358   :  { %v314_v26 = vpop.xlane.xlu1 %313 }
 0x359   :  { %v316_v28 = vmul.f32 0.0078125, %v314_v26 }
 0x35b   :  { %v318_v29 = vsub.f32 %v316_v28, %v317_v27 }
 0x35d   :  { %v319_v30 = vmax.f32 %v318_v29, 0.0 }
 0x35f   :  { %v321_v31 = vadd.f32 1e-05, %v319_v30 }
 0x361   :  { %662 = vrsqrt.f32 %v321_v31 }
 0x36b   :  { %v663_v33 = vpop.eup %662 }
 0x36c   :  { %v323_v35 = vmul.f32 %v663_v33, %v320_v32 }
 0x36e   :  { %v330_v36 = vmul.f32 %v468_v34, %v323_v35 }
 0x370   :  { %v337_v37 = vadd.f32 %v469_v0, %v330_v36 }
 0x372   :  { %v470_v38 = vmul.f32 -1.442695, %v337_v37 }
 0x374   :  { %664 = vpow2.f32 %v470_v38 }
 0x37e   :  { %v665_v39 = vpop.eup %664 }
 0x37f   :  { %v341_v40 = vadd.f32 1.0, %v665_v39 }
 0x381   :  { %666 = vrcp.f32 %v341_v40 }
 0x38b   :  { %v667_v41 = vpop.eup %666 }
 0x38c   :  { %v344_v42 = vmul.f32 %v667_v41, %v337_v37 }
 0x38e   :  { %590 = vmatmul.mubr.f32.vlgmr.msra.gmra.mrb[2].mxu0 %v344_v42 }
 0x461   :  { %v434_v45 = vpop.f32.mrb[2].mxu0 }
 0x462   :  { %v435_v47 = vadd.f32 %v471_v44, %v434_v45  ;;  %v591_v48 = vpop.f32.mrb[3].mxu0 }
 0x464   :  { %v441_v49 = vmax.f32 %v435_v47, -20.0 }
 0x466   :  { %v442_v50 = vmin.f32 %v441_v49, 2.0 }
 0x468   :  { %v443_v51 = vsel %vm440_vm2, %v442_v50, %v435_v47 }
 0x469   :  { %444 = vst [vmem:[#allocation10] sm:$0xff] %v443_v51 }
 0x46a   :  { %767 = shalt.err (!%p764_p8)
}
 0x46b   :  { %s768_s20 = scalar_lea.hbm %s978_s11, 128 }
 0x46c   :  { %p769_p9 = scmp.ne.s32.totalorder %s978_s11, %s768_s20  ;;  %p772_p10 = scmp.lt.u32.totalorder %s768_s20, %s978_s11 }
 0x46e   :  { %p774_p11 = pnand %p772_p10, %p769_p9 }
 0x470   :  { %777 = shalt.err (!%p774_p11)
}
 0x471   :  { %454 = dma.vmem_to_hbm [thread:$0]  %s452_s8, 128, %s978_s11, [#allocation4]  }
 0x472   :  { %784 = dma.done.wait [#allocation4], 128  }
 0x473   :  { %785 = vsyncadd [#allocation4], 4294967168 }
 0x474   :  { %458 = vsyncpa [#allocation3], 1 }
 0x475   :  { %459 = vsyncpa [#allocation6], 1 }
 0x476   :  { %460 = vsyncpa [#allocation9], 1 }
 0x477   :  { %461 = vsyncpa [#allocation4], 1 }

</bundles_post_ra>
